<compile_context>
chip_gen: v5e
topology: v5e:2x2
jax: 0.10.0
libtpu: 0.0.40
codegen_flags: <defaults>
</compile_context>

<pallas_src>
import functools
import math

import jax
import jax.numpy as jnp
from jax.experimental import pallas as pl
from jax.experimental.pallas import tpu as pltpu

_LANE = 128
_SUBLANE = 8
_BN_EPS = 1e-5


def _round_up(x, m):
    return (x + m - 1) // m * m


# ---------------------------------------------------------------------------
# Pallas kernels
# ---------------------------------------------------------------------------
def _mm_bias_act_kernel(p_ref, w_ref, b_ref, o_ref, *, relu):
    # conv-as-matmul (bf16 operands, f32 accumulate) + bias (+ ReLU).
    y = jnp.dot(p_ref[...], w_ref[...], preferred_element_type=jnp.float32)
    y = y + b_ref[...]
    if relu:
        y = jnp.maximum(y, 0.0)
    o_ref[...] = y


def _mm_bnstats_kernel(p_ref, w_ref, g_ref, bt_ref, y_ref, ss_ref,
                       sum_sc, sq_sc, *, inv_n, eps):
    # conv-as-matmul (no bias: it cancels against the BN mean subtraction)
    # plus single-pass accumulation of per-channel sum / sum-of-squares.
    # Row-grid axis is "arbitrary" so the VMEM scratch accumulators are global.
    i = pl.program_id(0)

    @pl.when(i == 0)
    def _():
        sum_sc[...] = jnp.zeros_like(sum_sc)
        sq_sc[...] = jnp.zeros_like(sq_sc)

    y = jnp.dot(p_ref[...], w_ref[...], preferred_element_type=jnp.float32)
    y_ref[...] = y
    sum_sc[...] += jnp.sum(y, axis=0, keepdims=True)
    sq_sc[...] += jnp.sum(y * y, axis=0, keepdims=True)

    @pl.when(i == pl.num_programs(0) - 1)
    def _():
        mean = sum_sc[...] * inv_n
        var = sq_sc[...] * inv_n - mean * mean          # biased batch variance
        scale = g_ref[...] * jax.lax.rsqrt(var + eps)   # fold gamma into scale
        shift = bt_ref[...] - mean * scale              # fold mean/beta into shift
        ss_ref[0:1, :] = scale
        ss_ref[1:2, :] = shift


def _scale_shift_relu_kernel(y_ref, ss_ref, o_ref):
    # BatchNorm normalize + affine + ReLU:  max(y*scale + shift, 0)
    o_ref[...] = jnp.maximum(y_ref[...] * ss_ref[0:1, :] + ss_ref[1:2, :], 0.0)


# ---------------------------------------------------------------------------
# pallas_call wrappers
# ---------------------------------------------------------------------------
def _compiler_params(semantics, tile_bytes):
    # Explicit scoped-VMEM budget: ~2x for double buffering plus margin, floored
    # at the 32 MiB default and capped below v7x's 64 MiB physical VMEM.
    limit = int(max(32 * 1024 * 1024, min(56 * 1024 * 1024, 4 * tile_bytes)))
    return pltpu.CompilerParams(dimension_semantics=semantics,
                                vmem_limit_bytes=limit)


def _choose_tm(rows, k_pad):
    # Row-tile size: big enough to amortize the ~0.35us per-grid-step overhead,
    # small enough that double-buffered (TM, K) bf16 + (TM, Cout) f32 tiles fit
    # the scoped budget on every generation (v7x's 64 MiB is the tightest).
    tm = 512 if k_pad <= 1024 else 256
    return min(tm, _round_up(rows, _SUBLANE))


def _conv_mm_bias_act(patches, wmat, bias, tm, relu):
    rows_pad, k_pad = patches.shape
    cout_pad = wmat.shape[1]
    grid = (rows_pad // tm,)
    tile_bytes = (tm * k_pad * 2 + k_pad * cout_pad * 2
                  + cout_pad * 4 + tm * cout_pad * 4)
    return pl.pallas_call(
        functools.partial(_mm_bias_act_kernel, relu=relu),
        out_shape=jax.ShapeDtypeStruct((rows_pad, cout_pad), jnp.float32),
        grid_spec=pltpu.PrefetchScalarGridSpec(
            num_scalar_prefetch=0,
            grid=grid,
            in_specs=[
                pl.BlockSpec((tm, k_pad), lambda i: (i, 0)),
                pl.BlockSpec((k_pad, cout_pad), lambda i: (0, 0)),
                pl.BlockSpec((1, cout_pad), lambda i: (0, 0)),
            ],
            out_specs=pl.BlockSpec((tm, cout_pad), lambda i: (i, 0)),
        ),
        compiler_params=_compiler_params(("parallel",), tile_bytes),
    )(patches, wmat, bias)


def _conv_mm_bn_relu(patches, wmat, gamma, beta, tm, n_valid_rows):
    rows_pad, k_pad = patches.shape
    cout_pad = wmat.shape[1]
    grid = (rows_pad // tm,)
    tile_bytes = (tm * k_pad * 2 + k_pad * cout_pad * 2
                  + 4 * cout_pad * 4 + tm * cout_pad * 4)

    # Pass 1: matmul + global per-channel stats.  Padded rows are all-zero
    # patches so they contribute 0 to sum/sumsq; divide by the true row count.
    y, ss = pl.pallas_call(
        functools.partial(_mm_bnstats_kernel,
                          inv_n=1.0 / float(n_valid_rows), eps=_BN_EPS),
        out_shape=(jax.ShapeDtypeStruct((rows_pad, cout_pad), jnp.float32),
                   jax.ShapeDtypeStruct((2, cout_pad), jnp.float32)),
        grid_spec=pltpu.PrefetchScalarGridSpec(
            num_scalar_prefetch=0,
            grid=grid,
            in_specs=[
                pl.BlockSpec((tm, k_pad), lambda i: (i, 0)),
                pl.BlockSpec((k_pad, cout_pad), lambda i: (0, 0)),
                pl.BlockSpec((1, cout_pad), lambda i: (0, 0)),
                pl.BlockSpec((1, cout_pad), lambda i: (0, 0)),
            ],
            out_specs=(pl.BlockSpec((tm, cout_pad), lambda i: (i, 0)),
                       pl.BlockSpec((2, cout_pad), lambda i: (0, 0))),
            scratch_shapes=[pltpu.VMEM((1, cout_pad), jnp.float32),
                            pltpu.VMEM((1, cout_pad), jnp.float32)],
        ),
        compiler_params=_compiler_params(("arbitrary",), tile_bytes),
    )(patches, wmat, gamma, beta)

    # Pass 2: normalize + affine + ReLU (row-parallel, lane-dense stores).
    tile_bytes2 = 2 * tm * cout_pad * 4 + 2 * cout_pad * 4
    return pl.pallas_call(
        _scale_shift_relu_kernel,
        out_shape=jax.ShapeDtypeStruct((rows_pad, cout_pad), jnp.float32),
        grid_spec=pltpu.PrefetchScalarGridSpec(
            num_scalar_prefetch=0,
            grid=grid,
            in_specs=[
                pl.BlockSpec((tm, cout_pad), lambda i: (i, 0)),
                pl.BlockSpec((2, cout_pad), lambda i: (0, 0)),
            ],
            out_specs=pl.BlockSpec((tm, cout_pad), lambda i: (i, 0)),
        ),
        compiler_params=_compiler_params(("parallel",), tile_bytes2),
    )(y, ss)


# ---------------------------------------------------------------------------
# Host-side glue: im2col patch extraction, weight / vector packing
# ---------------------------------------------------------------------------
def _im2col(x_nhwc, kh, kw, stride, pad):
    # TODO(synk): fuse patch extraction into the matmul kernel (loop over the
    # KH*KW taps on a VMEM-resident NHWC tile) to avoid materializing the
    # ~KH*KW-times-expanded patch matrix in HBM; kept host-side (in bf16) here.
    if pad:
        x_nhwc = jnp.pad(x_nhwc, ((0, 0), (pad, pad), (pad, pad), (0, 0)))
    n, h, w, c = x_nhwc.shape
    oh = (h - kh) // stride + 1
    ow = (w - kw) // stride + 1
    cols = []
    for i in range(kh):
        for j in range(kw):
            cols.append(
                x_nhwc[:, i:i + stride * oh:stride, j:j + stride * ow:stride, :])
    p = jnp.stack(cols, axis=3)                       # [N, OH, OW, KH*KW, C]
    return p.reshape(n * oh * ow, kh * kw * c), (n, oh, ow)


def _w_to_mat(w_oihw, k_pad, cout_pad):
    o, i, kh, kw = w_oihw.shape
    # match patch feature order (kh, kw, cin); zero-pad K and Cout to 128-lane
    # multiples; cast to bf16 for the MXU.
    wmat = jnp.transpose(w_oihw, (2, 3, 1, 0)).reshape(kh * kw * i, o)
    wmat = jnp.pad(wmat, ((0, k_pad - kh * kw * i), (0, cout_pad - o)))
    return wmat.astype(jnp.bfloat16)


def _pad_vec(v, cout_pad):
    return jnp.pad(v, (0, cout_pad - v.shape[0])).reshape(1, cout_pad)


# ---------------------------------------------------------------------------
# Parameter init (deterministic, PyTorch Conv2d-style uniform bounds)
# ---------------------------------------------------------------------------
def init_cnn_params(key, nc, nfm, out_dim, img_size):
    exp = int(math.log(img_size) / math.log(2))
    layer_cfg = [(nc, nfm, 4, 2, 1, "relu")]
    for i in range(exp - 3):
        layer_cfg.append(
            (nfm * 2 ** i, nfm * 2 ** (i + 1), 4, 2, 1, "bn_relu"))
    layer_cfg.append((nfm * 2 ** (exp - 3), out_dim, 4, 1, 0, "linear"))

    params = []
    for (cin, cout, k, s, p, kind) in layer_cfg:
        key, wk, bk = jax.random.split(key, 3)
        bound = 1.0 / math.sqrt(cin * k * k)
        w = jax.random.uniform(wk, (cout, cin, k, k), jnp.float32, -bound, bound)
        b = jax.random.uniform(bk, (cout,), jnp.float32, -bound, bound)
        layer = {"w": w, "b": b, "k": k, "s": s, "p": p, "kind": kind}
        if kind == "bn_relu":
            # Bias `b` is kept for module parity but intentionally not used in
            # the forward: a pre-BN per-channel bias is cancelled by the batch
            # mean subtraction.
            layer["gamma"] = jnp.ones((cout,), jnp.float32)   # BN default init
            layer["beta"] = jnp.zeros((cout,), jnp.float32)
        params.append(layer)
    return params


# ---------------------------------------------------------------------------
# Forward pass
# ---------------------------------------------------------------------------
def cnn_forward(x_nchw, params):
    x = jnp.transpose(x_nchw, (0, 2, 3, 1)).astype(jnp.float32)  # NCHW -> NHWC
    for layer in params:
        k, s, p = layer["k"], layer["s"], layer["p"]
        cout = layer["w"].shape[0]

        patches, (n, oh, ow) = _im2col(x.astype(jnp.bfloat16), k, k, s, p)
        rows, kdim = patches.shape
        k_pad = _round_up(kdim, _LANE)
        cout_pad = _round_up(cout, _LANE)
        tm = _choose_tm(rows, k_pad)
        rows_pad = _round_up(rows, tm)
        patches = jnp.pad(patches, ((0, rows_pad - rows), (0, k_pad - kdim)))
        wmat = _w_to_mat(layer["w"], k_pad, cout_pad)

        if layer["kind"] == "bn_relu":
            y = _conv_mm_bn_relu(patches, wmat,
                                 _pad_vec(layer["gamma"], cout_pad),
                                 _pad_vec(layer["beta"], cout_pad),
                                 tm, rows)
        else:
            y = _conv_mm_bias_act(patches, wmat,
                                  _pad_vec(layer["b"], cout_pad),
                                  tm, relu=(layer["kind"] == "relu"))

        x = y[:rows, :cout].reshape(n, oh, ow, cout)
    return jnp.transpose(x, (0, 3, 1, 2))             # NHWC -> NCHW


if __name__ == "__main__":
    key = jax.random.PRNGKey(0)
    kx, kp = jax.random.split(key)

    # Small shapes consistent with the module: img_size=16 -> exp=4, so the
    # network is Conv(4->8,4,2,1)+ReLU, Conv(8->16,4,2,1)+BN+ReLU,
    # Conv(16->1,4,1,0); spatial 16 -> 8 -> 4 -> 1.
    nc, nfm, out_dim, img_size = 4, 8, 1, 16
    x = jax.random.normal(kx, (2, nc, img_size, img_size), jnp.float32)

    params = init_cnn_params(kp, nc, nfm, out_dim, img_size)
    fwd = jax.jit(functools.partial(cnn_forward, params=params))
    out = jax.block_until_ready(fwd(x))

    assert out.shape == (2, out_dim, 1, 1), out.shape
    assert bool(jnp.all(jnp.isfinite(out)))
    print("KERNEL_OK")
</pallas_src>

<mosaic_0001>
module attributes {stable_mosaic.version = 11 : i64} {
  func.func @_mm_bias_act_kernel(%arg0: i32, %arg1: memref<128x128xbf16, #tpu.memory_space<vmem>>, %arg2: memref<128x128xbf16, #tpu.memory_space<vmem>>, %arg3: memref<1x128xf32, #tpu.memory_space<vmem>>, %arg4: memref<128x128xf32, #tpu.memory_space<vmem>>) attributes {dimension_semantics = [#tpu.dimension_semantics<parallel>], iteration_bounds = array<i64: 1>, scalar_prefetch = 0 : i64, scratch_operands = 0 : i64, tpu.core_type = #tpu.core_type<tc>, window_params = [{transform_indices = @transform_0, window_bounds = array<i64: 128, 128>}, {pipeline_mode = #tpu.pipeline_mode<synchronous>, transform_indices = @transform_1, window_bounds = array<i64: 128, 128>}, {pipeline_mode = #tpu.pipeline_mode<synchronous>, transform_indices = @transform_2, window_bounds = array<i64: 1, 128>}, {transform_indices = @transform_3, window_bounds = array<i64: 128, 128>}]} {
    %c0 = arith.constant 0 : index
    %c0_0 = arith.constant 0 : index
    %0 = vector.load %arg1[%c0, %c0_0] : memref<128x128xbf16, #tpu.memory_space<vmem>>, vector<128x128xbf16>
    %c0_1 = arith.constant 0 : index
    %c0_2 = arith.constant 0 : index
    %1 = vector.load %arg2[%c0_1, %c0_2] : memref<128x128xbf16, #tpu.memory_space<vmem>>, vector<128x128xbf16>
    %cst = arith.constant dense<0.000000e+00> : vector<128x128xf32>
    %2 = tpu.matmul %0, %1, %cst {dimension_numbers = #tpu.dot_dimension_numbers<[1], [0], [0], [1], [0, 0, 1, 1], [], []>} : vector<128x128xbf16>, vector<128x128xbf16>, vector<128x128xf32> -> vector<128x128xf32>
    %c0_3 = arith.constant 0 : index
    %c0_4 = arith.constant 0 : index
    %3 = vector.load %arg3[%c0_3, %c0_4] : memref<1x128xf32, #tpu.memory_space<vmem>>, vector<1x128xf32>
    %4 = vector.broadcast %3 : vector<1x128xf32> to vector<128x128xf32>
    %5 = arith.addf %2, %4 : vector<128x128xf32>
    %cst_5 = arith.constant 0.000000e+00 : f32
    %6 = vector.broadcast %cst_5 : f32 to vector<128x128xf32>
    %7 = arith.maximumf %5, %6 : vector<128x128xf32>
    %c0_6 = arith.constant 0 : index
    %c0_7 = arith.constant 0 : index
    %8 = vector.load %arg4[%c0_6, %c0_7] : memref<128x128xf32, #tpu.memory_space<vmem>>, vector<128x128xf32>
    tpu.vector_store %arg4[%c0_6, %c0_7], %7 {strides = array<i32>} : memref<128x128xf32, #tpu.memory_space<vmem>>, vector<128x128xf32>,
    return
  }
  func.func @transform_0(%arg0: i32) -> (i32, i32) {
    %c0_i32 = arith.constant 0 : i32
    %c0_i32_0 = arith.constant 0 : i32
    return %arg0, %c0_i32 : i32, i32
  }
  func.func @transform_1(%arg0: i32) -> (i32, i32) {
    %c0_i32 = arith.constant 0 : i32
    %c0_i32_0 = arith.constant 0 : i32
    %c0_i32_1 = arith.constant 0 : i32
    return %c0_i32, %c0_i32_0 : i32, i32
  }
  func.func @transform_2(%arg0: i32) -> (i32, i32) {
    %c0_i32 = arith.constant 0 : i32
    %c0_i32_0 = arith.constant 0 : i32
    %c0_i32_1 = arith.constant 0 : i32
    return %c0_i32, %c0_i32_0 : i32, i32
  }
  func.func @transform_3(%arg0: i32) -> (i32, i32) {
    %c0_i32 = arith.constant 0 : i32
    %c0_i32_0 = arith.constant 0 : i32
    return %arg0, %c0_i32 : i32, i32
  }
}

module attributes {stable_mosaic.version = 11 : i64} {
  func.func @_scale_shift_relu_kernel(%arg0: i32, %arg1: memref<32x128xf32, #tpu.memory_space<vmem>>, %arg2: memref<2x128xf32, #tpu.memory_space<vmem>>, %arg3: memref<32x128xf32, #tpu.memory_space<vmem>>) attributes {dimension_semantics = [#tpu.dimension_semantics<parallel>], iteration_bounds = array<i64: 1>, scalar_prefetch = 0 : i64, scratch_operands = 0 : i64, tpu.core_type = #tpu.core_type<tc>, window_params = [{transform_indices = @transform_0, window_bounds = array<i64: 32, 128>}, {pipeline_mode = #tpu.pipeline_mode<synchronous>, transform_indices = @transform_1, window_bounds = array<i64: 2, 128>}, {transform_indices = @transform_2, window_bounds = array<i64: 32, 128>}]} {
    %c0 = arith.constant 0 : index
    %c0_0 = arith.constant 0 : index
    %0 = vector.load %arg1[%c0, %c0_0] : memref<32x128xf32, #tpu.memory_space<vmem>>, vector<32x128xf32>
    %c0_1 = arith.constant 0 : index
    %c0_2 = arith.constant 0 : index
    %1 = vector.load %arg2[%c0_1, %c0_2] : memref<2x128xf32, #tpu.memory_space<vmem>>, vector<1x128xf32>
    %2 = vector.broadcast %1 : vector<1x128xf32> to vector<32x128xf32>
    %3 = arith.mulf %0, %2 : vector<32x128xf32>
    %c1 = arith.constant 1 : index
    %c0_3 = arith.constant 0 : index
    %4 = vector.load %arg2[%c1, %c0_3] : memref<2x128xf32, #tpu.memory_space<vmem>>, vector<1x128xf32>
    %5 = vector.broadcast %4 : vector<1x128xf32> to vector<32x128xf32>
    %6 = arith.addf %3, %5 : vector<32x128xf32>
    %cst = arith.constant 0.000000e+00 : f32
    %7 = vector.broadcast %cst : f32 to vector<32x128xf32>
    %8 = arith.maximumf %6, %7 : vector<32x128xf32>
    %c0_4 = arith.constant 0 : index
    %c0_5 = arith.constant 0 : index
    %9 = vector.load %arg3[%c0_4, %c0_5] : memref<32x128xf32, #tpu.memory_space<vmem>>, vector<32x128xf32>
    tpu.vector_store %arg3[%c0_4, %c0_5], %8 {strides = array<i32>} : memref<32x128xf32, #tpu.memory_space<vmem>>, vector<32x128xf32>,
    return
  }
  func.func @transform_0(%arg0: i32) -> (i32, i32) {
    %c0_i32 = arith.constant 0 : i32
    %c0_i32_0 = arith.constant 0 : i32
    return %arg0, %c0_i32 : i32, i32
  }
  func.func @transform_1(%arg0: i32) -> (i32, i32) {
    %c0_i32 = arith.constant 0 : i32
    %c0_i32_0 = arith.constant 0 : i32
    %c0_i32_1 = arith.constant 0 : i32
    return %c0_i32, %c0_i32_0 : i32, i32
  }
  func.func @transform_2(%arg0: i32) -> (i32, i32) {
    %c0_i32 = arith.constant 0 : i32
    %c0_i32_0 = arith.constant 0 : i32
    return %arg0, %c0_i32 : i32, i32
  }
}

module attributes {stable_mosaic.version = 11 : i64} {
  func.func @_mm_bnstats_kernel(%arg0: i32, %arg1: memref<32x128xbf16, #tpu.memory_space<vmem>>, %arg2: memref<128x128xbf16, #tpu.memory_space<vmem>>, %arg3: memref<1x128xf32, #tpu.memory_space<vmem>>, %arg4: memref<1x128xf32, #tpu.memory_space<vmem>>, %arg5: memref<32x128xf32, #tpu.memory_space<vmem>>, %arg6: memref<2x128xf32, #tpu.memory_space<vmem>>, %arg7: memref<1x128xf32, #tpu.memory_space<vmem>>, %arg8: memref<1x128xf32, #tpu.memory_space<vmem>>) attributes {dimension_semantics = [#tpu.dimension_semantics<arbitrary>], iteration_bounds = array<i64: 1>, scalar_prefetch = 0 : i64, scratch_operands = 2 : i64, tpu.core_type = #tpu.core_type<tc>, window_params = [{transform_indices = @transform_0, window_bounds = array<i64: 32, 128>}, {pipeline_mode = #tpu.pipeline_mode<synchronous>, transform_indices = @transform_1, window_bounds = array<i64: 128, 128>}, {pipeline_mode = #tpu.pipeline_mode<synchronous>, transform_indices = @transform_2, window_bounds = array<i64: 1, 128>}, {pipeline_mode = #tpu.pipeline_mode<synchronous>, transform_indices = @transform_3, window_bounds = array<i64: 1, 128>}, {transform_indices = @transform_4, window_bounds = array<i64: 32, 128>}, {pipeline_mode = #tpu.pipeline_mode<synchronous>, transform_indices = @transform_5, window_bounds = array<i64: 2, 128>}]} {
    %c0_i32 = arith.constant 0 : i32
    %0 = arith.cmpi eq, %arg0, %c0_i32 : i32
    %1 = arith.extui %0 : i1 to i32
    %c0_i32_0 = arith.constant 0 : i32
    %2 = arith.cmpi ne, %1, %c0_i32_0 : i32
    scf.if %2 {
      %cst_18 = arith.constant 0.000000e+00 : f32
      %21 = vector.broadcast %cst_18 : f32 to vector<1x128xf32>
      %c0_19 = arith.constant 0 : index
      %c0_20 = arith.constant 0 : index
      %22 = vector.load %arg7[%c0_19, %c0_20] : memref<1x128xf32, #tpu.memory_space<vmem>>, vector<1x128xf32>
      tpu.vector_store %arg7[%c0_19, %c0_20], %21 {strides = array<i32>} : memref<1x128xf32, #tpu.memory_space<vmem>>, vector<1x128xf32>,
      %cst_21 = arith.constant 0.000000e+00 : f32
      %23 = vector.broadcast %cst_21 : f32 to vector<1x128xf32>
      %c0_22 = arith.constant 0 : index
      %c0_23 = arith.constant 0 : index
      %24 = vector.load %arg8[%c0_22, %c0_23] : memref<1x128xf32, #tpu.memory_space<vmem>>, vector<1x128xf32>
      tpu.vector_store %arg8[%c0_22, %c0_23], %23 {strides = array<i32>} : memref<1x128xf32, #tpu.memory_space<vmem>>, vector<1x128xf32>,
    } else {
    }
    %c0 = arith.constant 0 : index
    %c0_1 = arith.constant 0 : index
    %3 = vector.load %arg1[%c0, %c0_1] : memref<32x128xbf16, #tpu.memory_space<vmem>>, vector<32x128xbf16>
    %c0_2 = arith.constant 0 : index
    %c0_3 = arith.constant 0 : index
    %4 = vector.load %arg2[%c0_2, %c0_3] : memref<128x128xbf16, #tpu.memory_space<vmem>>, vector<128x128xbf16>
    %cst = arith.constant dense<0.000000e+00> : vector<32x128xf32>
    %5 = tpu.matmul %3, %4, %cst {dimension_numbers = #tpu.dot_dimension_numbers<[1], [0], [0], [1], [0, 0, 1, 1], [], []>} : vector<32x128xbf16>, vector<128x128xbf16>, vector<32x128xf32> -> vector<32x128xf32>
    %c0_4 = arith.constant 0 : index
    %c0_5 = arith.constant 0 : index
    %6 = vector.load %arg5[%c0_4, %c0_5] : memref<32x128xf32, #tpu.memory_space<vmem>>, vector<32x128xf32>
    tpu.vector_store %arg5[%c0_4, %c0_5], %5 {strides = array<i32>} : memref<32x128xf32, #tpu.memory_space<vmem>>, vector<32x128xf32>,
    %c0_6 = arith.constant 0 : index
    %c0_7 = arith.constant 0 : index
    %7 = vector.load %arg7[%c0_6, %c0_7] : memref<1x128xf32, #tpu.memory_space<vmem>>, vector<1x128xf32>
    %cst_8 = arith.constant dense<0.000000e+00> : vector<128xf32>
    %8 = vector.multi_reduction <add>, %5, %cst_8 [0] : vector<32x128xf32> to vector<128xf32>
    %9 = vector.shape_cast %8 : vector<128xf32> to vector<1x128xf32>
    %10 = arith.addf %7, %9 : vector<1x128xf32>
    %c0_9 = arith.constant 0 : index
    %c0_10 = arith.constant 0 : index
    %11 = vector.load %arg7[%c0_9, %c0_10] : memref<1x128xf32, #tpu.memory_space<vmem>>, vector<1x128xf32>
    tpu.vector_store %arg7[%c0_9, %c0_10], %10 {strides = array<i32>} : memref<1x128xf32, #tpu.memory_space<vmem>>, vector<1x128xf32>,
    %c0_11 = arith.constant 0 : index
    %c0_12 = arith.constant 0 : index
    %12 = vector.load %arg8[%c0_11, %c0_12] : memref<1x128xf32, #tpu.memory_space<vmem>>, vector<1x128xf32>
    %13 = arith.mulf %5, %5 : vector<32x128xf32>
    %cst_13 = arith.constant dense<0.000000e+00> : vector<128xf32>
    %14 = vector.multi_reduction <add>, %13, %cst_13 [0] : vector<32x128xf32> to vector<128xf32>
    %15 = vector.shape_cast %14 : vector<128xf32> to vector<1x128xf32>
    %16 = arith.addf %12, %15 : vector<1x128xf32>
    %c0_14 = arith.constant 0 : index
    %c0_15 = arith.constant 0 : index
    %17 = vector.load %arg8[%c0_14, %c0_15] : memref<1x128xf32, #tpu.memory_space<vmem>>, vector<1x128xf32>
    tpu.vector_store %arg8[%c0_14, %c0_15], %16 {strides = array<i32>} : memref<1x128xf32, #tpu.memory_space<vmem>>, vector<1x128xf32>,
    %c0_i32_16 = arith.constant 0 : i32
    %18 = arith.cmpi eq, %arg0, %c0_i32_16 : i32
    %19 = arith.extui %18 : i1 to i32
    %c0_i32_17 = arith.constant 0 : i32
    %20 = arith.cmpi ne, %19, %c0_i32_17 : i32
    scf.if %20 {
      %c0_18 = arith.constant 0 : index
      %c0_19 = arith.constant 0 : index
      %21 = vector.load %arg7[%c0_18, %c0_19] : memref<1x128xf32, #tpu.memory_space<vmem>>, vector<1x128xf32>
      %cst_20 = arith.constant 3.125000e-02 : f32
      %22 = vector.broadcast %cst_20 : f32 to vector<1x128xf32>
      %23 = arith.mulf %21, %22 : vector<1x128xf32>
      %c0_21 = arith.constant 0 : index
      %c0_22 = arith.constant 0 : index
      %24 = vector.load %arg8[%c0_21, %c0_22] : memref<1x128xf32, #tpu.memory_space<vmem>>, vector<1x128xf32>
      %cst_23 = arith.constant 3.125000e-02 : f32
      %25 = vector.broadcast %cst_23 : f32 to vector<1x128xf32>
      %26 = arith.mulf %24, %25 : vector<1x128xf32>
      %27 = arith.mulf %23, %23 : vector<1x128xf32>
      %28 = arith.subf %26, %27 : vector<1x128xf32>
      %c0_24 = arith.constant 0 : index
      %c0_25 = arith.constant 0 : index
      %29 = vector.load %arg3[%c0_24, %c0_25] : memref<1x128xf32, #tpu.memory_space<vmem>>, vector<1x128xf32>
      %cst_26 = arith.constant 9.99999974E-6 : f32
      %30 = vector.broadcast %cst_26 : f32 to vector<1x128xf32>
      %31 = arith.addf %28, %30 : vector<1x128xf32>
      %32 = math.rsqrt %31 : vector<1x128xf32>
      %33 = arith.mulf %29, %32 : vector<1x128xf32>
      %c0_27 = arith.constant 0 : index
      %c0_28 = arith.constant 0 : index
      %34 = vector.load %arg4[%c0_27, %c0_28] : memref<1x128xf32, #tpu.memory_space<vmem>>, vector<1x128xf32>
      %35 = arith.mulf %23, %33 : vector<1x128xf32>
      %36 = arith.subf %34, %35 : vector<1x128xf32>
      %c0_29 = arith.constant 0 : index
      %c0_30 = arith.constant 0 : index
      %37 = vector.load %arg6[%c0_29, %c0_30] : memref<2x128xf32, #tpu.memory_space<vmem>>, vector<1x128xf32>
      tpu.vector_store %arg6[%c0_29, %c0_30], %33 {strides = array<i32>} : memref<2x128xf32, #tpu.memory_space<vmem>>, vector<1x128xf32>,
      %c1 = arith.constant 1 : index
      %c0_31 = arith.constant 0 : index
      %38 = vector.load %arg6[%c1, %c0_31] : memref<2x128xf32, #tpu.memory_space<vmem>>, vector<1x128xf32>
      tpu.vector_store %arg6[%c1, %c0_31], %36 {strides = array<i32>} : memref<2x128xf32, #tpu.memory_space<vmem>>, vector<1x128xf32>,
    } else {
    }
    return
  }
  func.func @transform_0(%arg0: i32) -> (i32, i32) {
    %c0_i32 = arith.constant 0 : i32
    %c0_i32_0 = arith.constant 0 : i32
    return %arg0, %c0_i32 : i32, i32
  }
  func.func @transform_1(%arg0: i32) -> (i32, i32) {
    %c0_i32 = arith.constant 0 : i32
    %c0_i32_0 = arith.constant 0 : i32
    %c0_i32_1 = arith.constant 0 : i32
    return %c0_i32, %c0_i32_0 : i32, i32
  }
  func.func @transform_2(%arg0: i32) -> (i32, i32) {
    %c0_i32 = arith.constant 0 : i32
    %c0_i32_0 = arith.constant 0 : i32
    %c0_i32_1 = arith.constant 0 : i32
    return %c0_i32, %c0_i32_0 : i32, i32
  }
  func.func @transform_3(%arg0: i32) -> (i32, i32) {
    %c0_i32 = arith.constant 0 : i32
    %c0_i32_0 = arith.constant 0 : i32
    %c0_i32_1 = arith.constant 0 : i32
    return %c0_i32, %c0_i32_0 : i32, i32
  }
  func.func @transform_4(%arg0: i32) -> (i32, i32) {
    %c0_i32 = arith.constant 0 : i32
    %c0_i32_0 = arith.constant 0 : i32
    return %arg0, %c0_i32 : i32, i32
  }
  func.func @transform_5(%arg0: i32) -> (i32, i32) {
    %c0_i32 = arith.constant 0 : i32
    %c0_i32_0 = arith.constant 0 : i32
    %c0_i32_1 = arith.constant 0 : i32
    return %c0_i32, %c0_i32_0 : i32, i32
  }
}

module attributes {stable_mosaic.version = 11 : i64} {
  func.func @_mm_bias_act_kernel(%arg0: i32, %arg1: memref<8x256xbf16, #tpu.memory_space<vmem>>, %arg2: memref<256x128xbf16, #tpu.memory_space<vmem>>, %arg3: memref<1x128xf32, #tpu.memory_space<vmem>>, %arg4: memref<8x128xf32, #tpu.memory_space<vmem>>) attributes {dimension_semantics = [#tpu.dimension_semantics<parallel>], iteration_bounds = array<i64: 1>, scalar_prefetch = 0 : i64, scratch_operands = 0 : i64, tpu.core_type = #tpu.core_type<tc>, window_params = [{transform_indices = @transform_0, window_bounds = array<i64: 8, 256>}, {pipeline_mode = #tpu.pipeline_mode<synchronous>, transform_indices = @transform_1, window_bounds = array<i64: 256, 128>}, {pipeline_mode = #tpu.pipeline_mode<synchronous>, transform_indices = @transform_2, window_bounds = array<i64: 1, 128>}, {transform_indices = @transform_3, window_bounds = array<i64: 8, 128>}]} {
    %c0 = arith.constant 0 : index
    %c0_0 = arith.constant 0 : index
    %0 = vector.load %arg1[%c0, %c0_0] : memref<8x256xbf16, #tpu.memory_space<vmem>>, vector<8x256xbf16>
    %c0_1 = arith.constant 0 : index
    %c0_2 = arith.constant 0 : index
    %1 = vector.load %arg2[%c0_1, %c0_2] : memref<256x128xbf16, #tpu.memory_space<vmem>>, vector<256x128xbf16>
    %cst = arith.constant dense<0.000000e+00> : vector<8x128xf32>
    %2 = tpu.matmul %0, %1, %cst {dimension_numbers = #tpu.dot_dimension_numbers<[1], [0], [0], [1], [0, 0, 1, 1], [], []>} : vector<8x256xbf16>, vector<256x128xbf16>, vector<8x128xf32> -> vector<8x128xf32>
    %c0_3 = arith.constant 0 : index
    %c0_4 = arith.constant 0 : index
    %3 = vector.load %arg3[%c0_3, %c0_4] : memref<1x128xf32, #tpu.memory_space<vmem>>, vector<1x128xf32>
    %4 = vector.broadcast %3 : vector<1x128xf32> to vector<8x128xf32>
    %5 = arith.addf %2, %4 : vector<8x128xf32>
    %c0_5 = arith.constant 0 : index
    %c0_6 = arith.constant 0 : index
    %6 = vector.load %arg4[%c0_5, %c0_6] : memref<8x128xf32, #tpu.memory_space<vmem>>, vector<8x128xf32>
    tpu.vector_store %arg4[%c0_5, %c0_6], %5 {strides = array<i32>} : memref<8x128xf32, #tpu.memory_space<vmem>>, vector<8x128xf32>,
    return
  }
  func.func @transform_0(%arg0: i32) -> (i32, i32) {
    %c0_i32 = arith.constant 0 : i32
    %c0_i32_0 = arith.constant 0 : i32
    return %arg0, %c0_i32 : i32, i32
  }
  func.func @transform_1(%arg0: i32) -> (i32, i32) {
    %c0_i32 = arith.constant 0 : i32
    %c0_i32_0 = arith.constant 0 : i32
    %c0_i32_1 = arith.constant 0 : i32
    return %c0_i32, %c0_i32_0 : i32, i32
  }
  func.func @transform_2(%arg0: i32) -> (i32, i32) {
    %c0_i32 = arith.constant 0 : i32
    %c0_i32_0 = arith.constant 0 : i32
    %c0_i32_1 = arith.constant 0 : i32
    return %c0_i32, %c0_i32_0 : i32, i32
  }
  func.func @transform_3(%arg0: i32) -> (i32, i32) {
    %c0_i32 = arith.constant 0 : i32
    %c0_i32_0 = arith.constant 0 : i32
    return %arg0, %c0_i32 : i32, i32
  }
}

</mosaic_0001>

<bundles_post_ra>
// kernel: cnn_forward.4
= control target key start
LH: loop header
LB: loop body
LE: loop exit
PB: predicated region body
PF: predicated region fallthrough
CT: control target
= control target key end

     0   :  { %s455_s1 = inlined_call_operand.vmem [shape: bf16[128,128], index: 1, kind: input, shape index: {}]   ;;  %s456_s2 = inlined_call_operand.vmem [shape: f32[1,128], index: 2, kind: input, shape index: {}]   ;;  %s457_s0 = inlined_call_operand.vmem [shape: bf16[128,128], index: 0, kind: input, shape index: {}]   ;;  %s458_s3 = inlined_call_operand.vmem [shape: f32[128,128], index: 3, kind: output, shape index: {}]  }
   0x1   :  { %v310_v0 = vld [vmem:[%s455_s1 + $0x38] sm:$0xff]  ;;  %v309_v1 = vld [vmem:[%s455_s1 + $0x30] sm:$0xff]  ;;  %v308_v2 = vld [vmem:[%s455_s1 + $0x28] sm:$0xff] }
   0x2   :  { %146 = vmatpush.bf16.msra.mxu0 %v310_v0  ;;  %311 = vmatpush.bf16.msra.mxu1 %v310_v0  ;;  %v307_v3 = vld [vmem:[%s455_s1 + $0x20] sm:$0xff]  ;;  %v306_v4 = vld [vmem:[%s455_s1 + $0x18] sm:$0xff]  ;;  %v305_v5 = vld [vmem:[%s455_s1 + $0x10] sm:$0xff] }
   0x3   :  { %312 = vmatpush.bf16.msra.mxu2 %v310_v0  ;;  %313 = vmatpush.bf16.msra.mxu3 %v310_v0  ;;  %v304_v6 = vld [vmem:[%s455_s1 + $0x8] sm:$0xff]  ;;  %v303_v7 = vld [vmem:[%s455_s1] sm:$0xff]  ;;  %v297_v9 = vld [vmem:[%s457_s0 + $0x10] sm:$0xff] }
   0x4   :  { %v295_v8 = vld [vmem:[%s457_s0] sm:$0xff]  ;;  %v301_v11 = vld [vmem:[%s457_s0 + $0x30] sm:$0xff]  ;;  %v296_v12 = vld [vmem:[%s457_s0 + $0x8] sm:$0xff] }
   0x5   :  { %v299_v10 = vld [vmem:[%s457_s0 + $0x20] sm:$0xff]  ;;  %v298_v13 = vld [vmem:[%s457_s0 + $0x18] sm:$0xff]  ;;  %v300_v14 = vld [vmem:[%s457_s0 + $0x28] sm:$0xff] }
   0x6   :  { %147 = vmatpush.bf16.msra.mxu0 %v309_v1  ;;  %314 = vmatpush.bf16.msra.mxu1 %v309_v1  ;;  %v302_v15 = vld [vmem:[%s457_s0 + $0x38] sm:$0xff]  ;;  %v335_v16 = vld [vmem:[%s456_s2] ss:$0 sm:$0xff] }
   0x7   :  { %315 = vmatpush.bf16.msra.mxu2 %v309_v1  ;;  %316 = vmatpush.bf16.msra.mxu3 %v309_v1 }
   0xa   :  { %148 = vmatpush.bf16.msra.mxu0 %v308_v2  ;;  %317 = vmatpush.bf16.msra.mxu1 %v308_v2 }
   0xb   :  { %318 = vmatpush.bf16.msra.mxu2 %v308_v2  ;;  %319 = vmatpush.bf16.msra.mxu3 %v308_v2 }
   0xe   :  { %149 = vmatpush.bf16.msra.mxu0 %v307_v3  ;;  %320 = vmatpush.bf16.msra.mxu1 %v307_v3 }
   0xf   :  { %321 = vmatpush.bf16.msra.mxu2 %v307_v3  ;;  %322 = vmatpush.bf16.msra.mxu3 %v307_v3 }
  0x12   :  { %150 = vmatpush.bf16.msra.mxu0 %v306_v4  ;;  %323 = vmatpush.bf16.msra.mxu1 %v306_v4 }
  0x13   :  { %324 = vmatpush.bf16.msra.mxu2 %v306_v4  ;;  %325 = vmatpush.bf16.msra.mxu3 %v306_v4 }
  0x16   :  { %151 = vmatpush.bf16.msra.mxu0 %v305_v5  ;;  %326 = vmatpush.bf16.msra.mxu1 %v305_v5 }
  0x17   :  { %327 = vmatpush.bf16.msra.mxu2 %v305_v5  ;;  %328 = vmatpush.bf16.msra.mxu3 %v305_v5 }
  0x1a   :  { %152 = vmatpush.bf16.msra.mxu0 %v304_v6  ;;  %329 = vmatpush.bf16.msra.mxu1 %v304_v6 }
  0x1b   :  { %330 = vmatpush.bf16.msra.mxu2 %v304_v6  ;;  %331 = vmatpush.bf16.msra.mxu3 %v304_v6 }
  0x1e   :  { %153 = vmatpush.bf16.msra.mxu0 %v303_v7  ;;  %332 = vmatpush.bf16.msra.mxu1 %v303_v7 }
  0x1f   :  { %333 = vmatpush.bf16.msra.mxu2 %v303_v7  ;;  %334 = vmatpush.bf16.msra.mxu3 %v303_v7 }
  0x21   :  { %154 = vmatmul.bf16.vlgmr.msra.gmra.mxu0 %v295_v8  ;;  %164 = vmatmul.bf16.vlgmr.msra.gmra.mxu1 %v297_v9 }
  0x22   :  { %174 = vmatmul.bf16.vlgmr.msra.gmra.mxu2 %v299_v10  ;;  %184 = vmatmul.bf16.vlgmr.msra.gmra.mxu3 %v301_v11 }
  0x31   :  { %159 = vmatmul.bf16.gmra.mxu0 %v296_v12  ;;  %169 = vmatmul.bf16.gmra.mxu1 %v298_v13 }
  0x32   :  { %179 = vmatmul.bf16.gmra.mxu2 %v300_v14  ;;  %189 = vmatmul.bf16.gmra.mxu3 %v302_v15 }
  0x9e   :  { %v155_v17 = vpop.f32.mrf.mxu0  ;;  %v165_v18 = vpop.f32.mrf.mxu1 }
  0x9f   :  { %v156_v19 = vadd.f32 %v335_v16, %v155_v17  ;;  %v166_v20 = vadd.f32 %v335_v16, %v165_v18 }
  0xa1   :  { %v195_v21 = vmax.f32 %v156_v19, 0.0  ;;  %v199_v22 = vmax.f32 %v166_v20, 0.0 }
  0xa3   :  { %211 = vst [vmem:[%s458_s3] sm:$0xff] %v195_v21 }
  0xa4   :  { %215 = vst [vmem:[%s458_s3 + $0x20] sm:$0xff] %v199_v22 }
  0xa5   :  { %v175_v23 = vpop.f32.mrf.mxu2  ;;  %v185_v24 = vpop.f32.mrf.mxu3 }
  0xa6   :  { %v176_v25 = vadd.f32 %v335_v16, %v175_v23  ;;  %v186_v26 = vadd.f32 %v335_v16, %v185_v24  ;;  %v157_v27 = vpop.f32.mrf.mxu0  ;;  %v167_v28 = vpop.f32.mrf.mxu1 }
  0xa7   :  { %v158_v29 = vadd.f32 %v335_v16, %v157_v27  ;;  %v168_v30 = vadd.f32 %v335_v16, %v167_v28 }
  0xa8   :  { %v203_v31 = vmax.f32 %v176_v25, 0.0  ;;  %v207_v32 = vmax.f32 %v186_v26, 0.0 }
  0xa9   :  { %v196_v33 = vmax.f32 %v158_v29, 0.0  ;;  %v200_v34 = vmax.f32 %v168_v30, 0.0 }
  0xaa   :  { %219 = vst [vmem:[%s458_s3 + $0x40] sm:$0xff] %v203_v31 }
  0xab   :  { %223 = vst [vmem:[%s458_s3 + $0x60] sm:$0xff] %v207_v32 }
  0xac   :  { %212 = vst [vmem:[%s458_s3 + $0x8] sm:$0xff] %v196_v33 }
  0xad   :  { %216 = vst [vmem:[%s458_s3 + $0x28] sm:$0xff] %v200_v34  ;;  %v177_v35 = vpop.f32.mrf.mxu2  ;;  %v187_v36 = vpop.f32.mrf.mxu3 }
  0xae   :  { %v178_v37 = vadd.f32 %v335_v16, %v177_v35  ;;  %v188_v38 = vadd.f32 %v335_v16, %v187_v36  ;;  %v160_v39 = vpop.f32.mrf.mxu0  ;;  %v170_v40 = vpop.f32.mrf.mxu1 }
  0xaf   :  { %v161_v41 = vadd.f32 %v335_v16, %v160_v39  ;;  %v171_v42 = vadd.f32 %v335_v16, %v170_v40 }
  0xb0   :  { %v204_v43 = vmax.f32 %v178_v37, 0.0  ;;  %v208_v44 = vmax.f32 %v188_v38, 0.0 }
  0xb1   :  { %v197_v45 = vmax.f32 %v161_v41, 0.0  ;;  %v201_v46 = vmax.f32 %v171_v42, 0.0 }
  0xb2   :  { %220 = vst [vmem:[%s458_s3 + $0x48] sm:$0xff] %v204_v43 }
  0xb3   :  { %224 = vst [vmem:[%s458_s3 + $0x68] sm:$0xff] %v208_v44 }
  0xb4   :  { %213 = vst [vmem:[%s458_s3 + $0x10] sm:$0xff] %v197_v45 }
  0xb5   :  { %217 = vst [vmem:[%s458_s3 + $0x30] sm:$0xff] %v201_v46  ;;  %v180_v47 = vpop.f32.mrf.mxu2  ;;  %v190_v48 = vpop.f32.mrf.mxu3 }
  0xb6   :  { %v181_v49 = vadd.f32 %v335_v16, %v180_v47  ;;  %v191_v50 = vadd.f32 %v335_v16, %v190_v48  ;;  %v162_v51 = vpop.f32.mrf.mxu0  ;;  %v172_v52 = vpop.f32.mrf.mxu1 }
  0xb7   :  { %v163_v53 = vadd.f32 %v335_v16, %v162_v51  ;;  %v173_v54 = vadd.f32 %v335_v16, %v172_v52 }
  0xb8   :  { %v205_v55 = vmax.f32 %v181_v49, 0.0  ;;  %v209_v56 = vmax.f32 %v191_v50, 0.0 }
  0xb9   :  { %v198_v57 = vmax.f32 %v163_v53, 0.0  ;;  %v202_v58 = vmax.f32 %v173_v54, 0.0 }
  0xba   :  { %221 = vst [vmem:[%s458_s3 + $0x50] sm:$0xff] %v205_v55 }
  0xbb   :  { %225 = vst [vmem:[%s458_s3 + $0x70] sm:$0xff] %v209_v56 }
  0xbc   :  { %214 = vst [vmem:[%s458_s3 + $0x18] sm:$0xff] %v198_v57 }
  0xbd   :  { %218 = vst [vmem:[%s458_s3 + $0x38] sm:$0xff] %v202_v58  ;;  %v182_v59 = vpop.f32.mrf.mxu2  ;;  %v192_v60 = vpop.f32.mrf.mxu3 }
  0xbe   :  { %v183_v61 = vadd.f32 %v335_v16, %v182_v59  ;;  %v193_v62 = vadd.f32 %v335_v16, %v192_v60 }
  0xc0   :  { %v206_v63 = vmax.f32 %v183_v61, 0.0  ;;  %v210_v0 = vmax.f32 %v193_v62, 0.0 }
  0xc2   :  { %222 = vst [vmem:[%s458_s3 + $0x58] sm:$0xff] %v206_v63 }
  0xc3   :  { %226 = vst [vmem:[%s458_s3 + $0x78] sm:$0xff] %v210_v0 }

// kernel: cnn_forward.6
= control target key start
LH: loop header
LB: loop body
LE: loop exit
PB: predicated region body
PF: predicated region fallthrough
CT: control target
= control target key end

     0   :  { %s86_s0 = inlined_call_operand.vmem [shape: f32[32,128], index: 0, kind: input, shape index: {}]   ;;  %s87_s1 = inlined_call_operand.vmem [shape: f32[2,128], index: 1, kind: input, shape index: {}]   ;;  %s88_s2 = inlined_call_operand.vmem [shape: f32[32,128], index: 2, kind: output, shape index: {}]  }
   0x1   :  { %v11_v0 = vld [vmem:[%s86_s0] sm:$0xff]  ;;  %v12_v3 = vld [vmem:[%s86_s0 + $0x8] sm:$0xff]  ;;  %v13_v6 = vld [vmem:[%s86_s0 + $0x10] sm:$0xff] }
   0x2   :  { %v39_v1 = vld [vmem:[%s87_s1] ss:$0 sm:$0xff]  ;;  %v40_v2 = vld [vmem:[%s87_s1 + $0x1] ss:$0 sm:$0xff]  ;;  %v14_v7 = vld [vmem:[%s86_s0 + $0x18] sm:$0xff] }
   0x3   :  { %v17_v4 = vmul.f32 %v39_v1, %v11_v0  ;;  %v18_v5 = vmul.f32 %v39_v1, %v12_v3  ;;  %v19_v8 = vmul.f32 %v39_v1, %v13_v6  ;;  %v20_v9 = vmul.f32 %v39_v1, %v14_v7 }
   0x5   :  { %v23_v10 = vadd.f32 %v40_v2, %v17_v4  ;;  %v24_v11 = vadd.f32 %v40_v2, %v18_v5  ;;  %v25_v12 = vadd.f32 %v40_v2, %v19_v8  ;;  %v26_v13 = vadd.f32 %v40_v2, %v20_v9 }
   0x7   :  { %v27_v14 = vmax.f32 %v23_v10, 0.0  ;;  %v28_v15 = vmax.f32 %v24_v11, 0.0  ;;  %v29_v16 = vmax.f32 %v25_v12, 0.0  ;;  %v30_v17 = vmax.f32 %v26_v13, 0.0 }
   0x9   :  { %31 = vst [vmem:[%s88_s2] sm:$0xff] %v27_v14 }
   0xa   :  { %32 = vst [vmem:[%s88_s2 + $0x8] sm:$0xff] %v28_v15 }
   0xb   :  { %33 = vst [vmem:[%s88_s2 + $0x10] sm:$0xff] %v29_v16 }
   0xc   :  { %34 = vst [vmem:[%s88_s2 + $0x18] sm:$0xff] %v30_v17 }

// kernel: cnn_forward.5
= control target key start
LH: loop header
LB: loop body
LE: loop exit
PB: predicated region body
PF: predicated region fallthrough
CT: control target
= control target key end

     0   :  { %v252_v10 = vmov 0.0   ;;  %s337_s1 = inlined_call_operand.vmem [shape: bf16[128,128], index: 1, kind: input, shape index: {}]   ;;  %s338_s0 = inlined_call_operand.vmem [shape: bf16[32,128], index: 0, kind: input, shape index: {}]   ;;  %s339_s4 = inlined_call_operand.vmem [shape: f32[32,128], index: 4, kind: output, shape index: {0}]   ;;  %s340_s2 = inlined_call_operand.vmem [shape: f32[1,128], index: 2, kind: input, shape index: {}]   ;;  %s341_s3 = inlined_call_operand.vmem [shape: f32[1,128], index: 3, kind: input, shape index: {}]   ;;  %s342_s5 = inlined_call_operand.vmem [shape: f32[2,128], index: 5, kind: output, shape index: {1}]  }
   0x1   :  { %v240_v0 = vld [vmem:[%s337_s1 + $0x38] sm:$0xff]  ;;  %v239_v1 = vld [vmem:[%s337_s1 + $0x30] sm:$0xff]  ;;  %v238_v2 = vld [vmem:[%s337_s1 + $0x28] sm:$0xff]  ;;  %23 = vst [vmem:[#allocation2] sm:$0x1] %v252_v10 }
   0x2   :  { %105 = vmatpush.bf16.msra.mxu0 %v240_v0  ;;  %241 = vmatpush.bf16.msra.mxu1 %v240_v0  ;;  %v237_v3 = vld [vmem:[%s337_s1 + $0x20] sm:$0xff]  ;;  %v236_v4 = vld [vmem:[%s337_s1 + $0x18] sm:$0xff]  ;;  %v235_v5 = vld [vmem:[%s337_s1 + $0x10] sm:$0xff]  ;;  %24 = vst [vmem:[#allocation3] sm:$0x1] %v252_v10 }
   0x3   :  { %v234_v6 = vld [vmem:[%s337_s1 + $0x8] sm:$0xff]  ;;  %v233_v7 = vld [vmem:[%s337_s1] sm:$0xff] }
   0x4   :  { %v231_v8 = vld [vmem:[%s338_s0] sm:$0xff]  ;;  %v232_v9 = vld [vmem:[%s338_s0 + $0x8] sm:$0xff] }
   0x5   :  { %v165_v53 = vld [vmem:[%s340_s2] sm:$0x1] }
   0x6   :  { %106 = vmatpush.bf16.msra.mxu0 %v239_v1  ;;  %242 = vmatpush.bf16.msra.mxu1 %v239_v1  ;;  %v178_v57 = vld [vmem:[%s341_s3] sm:$0x1] }
   0x8   :  { %v128_v34 = vld [vmem:[#allocation2] sm:$0x1] }
   0x9   :  { %v140_v37 = vld [vmem:[#allocation3] sm:$0x1] }
   0xa   :  { %107 = vmatpush.bf16.msra.mxu0 %v238_v2  ;;  %243 = vmatpush.bf16.msra.mxu1 %v238_v2 }
   0xe   :  { %108 = vmatpush.bf16.msra.mxu0 %v237_v3  ;;  %244 = vmatpush.bf16.msra.mxu1 %v237_v3 }
  0x12   :  { %109 = vmatpush.bf16.msra.mxu0 %v236_v4  ;;  %245 = vmatpush.bf16.msra.mxu1 %v236_v4 }
  0x16   :  { %110 = vmatpush.bf16.msra.mxu0 %v235_v5  ;;  %246 = vmatpush.bf16.msra.mxu1 %v235_v5 }
  0x1a   :  { %111 = vmatpush.bf16.msra.mxu0 %v234_v6  ;;  %247 = vmatpush.bf16.msra.mxu1 %v234_v6 }
  0x1e   :  { %112 = vmatpush.bf16.msra.mxu0 %v233_v7  ;;  %248 = vmatpush.bf16.msra.mxu1 %v233_v7 }
  0x21   :  { %113 = vmatmul.bf16.vlgmr.msra.gmra.mxu0 %v231_v8  ;;  %118 = vmatmul.bf16.vlgmr.msra.gmra.mxu1 %v232_v9 }
  0x9e   :  { %v114_v11 = vpop.f32.mrf.mxu0  ;;  %v119_v12 = vpop.f32.mrf.mxu1 }
  0x9f   :  { %124 = vst [vmem:[%s339_s4] sm:$0xff] %v114_v11  ;;  %v141_v15 = vmul.f32 %v114_v11, %v114_v11  ;;  %v143_v18 = vmul.f32 %v119_v12, %v119_v12 }
  0xa0   :  { %126 = vst [vmem:[%s339_s4 + $0x10] sm:$0xff] %v119_v12 }
  0xa6   :  { %v116_v13 = vpop.f32.mrf.mxu0  ;;  %v121_v14 = vpop.f32.mrf.mxu1 }
  0xa7   :  { %125 = vst [vmem:[%s339_s4 + $0x8] sm:$0xff] %v116_v13  ;;  %v129_v16 = vadd.f32 %v116_v13, %v114_v11  ;;  %v142_v17 = vmul.f32 %v116_v13, %v116_v13  ;;  %v144_v22 = vmul.f32 %v121_v14, %v121_v14 }
  0xa8   :  { %127 = vst [vmem:[%s339_s4 + $0x18] sm:$0xff] %v121_v14 }
  0xa9   :  { %v145_v19 = vadd.f32 %v142_v17, %v141_v15  ;;  %v130_v20 = vadd.f32 %v129_v16, %v119_v12 }
  0xab   :  { %v131_v21 = vadd.f32 %v130_v20, %v121_v14  ;;  %v146_v23 = vadd.f32 %v145_v19, %v143_v18 }
  0xad   :  { %v132_v24 = vrot.slane %v131_v21, 4  ;;  %v147_v25 = vadd.f32 %v146_v23, %v144_v22 }
  0xaf   :  { %v133_v26 = vadd.f32 %v132_v24, %v131_v21  ;;  %v148_v27 = vrot.slane %v147_v25, 4 }
  0xb1   :  { %v134_v28 = vrot.slane %v133_v26, 2  ;;  %v149_v29 = vadd.f32 %v148_v27, %v147_v25 }
  0xb3   :  { %v135_v30 = vadd.f32 %v134_v28, %v133_v26  ;;  %v150_v31 = vrot.slane %v149_v29, 2 }
  0xb5   :  { %v136_v32 = vrot.slane %v135_v30, 1  ;;  %v151_v33 = vadd.f32 %v150_v31, %v149_v29 }
  0xb7   :  { %v137_v35 = vadd.f32 %v136_v32, %v135_v30  ;;  %v152_v36 = vrot.slane %v151_v33, 1 }
  0xb9   :  { %v138_v38 = vadd.f32 %v137_v35, %v128_v34  ;;  %v153_v39 = vadd.f32 %v152_v36, %v151_v33 }
  0xbb   :  { %139 = vst [vmem:[#allocation2] sm:$0x1] %v138_v38  ;;  %v154_v40 = vadd.f32 %v153_v39, %v140_v37 }
  0xbd   :  { %155 = vst [vmem:[#allocation3] sm:$0x1] %v154_v40 }
  0xc2   :  { %v159_v41 = vld [vmem:[#allocation2] sm:$0x1] }
  0xc3   :  { %v160_v42 = vmul.f32 0.03125, %v159_v41 }
  0xc4   :  { %v161_v43 = vld [vmem:[#allocation3] sm:$0x1] }
  0xc5   :  { %v162_v44 = vmul.f32 0.03125, %v161_v43  ;;  %v163_v45 = vmul.f32 %v160_v42, %v160_v42 }
  0xc7   :  { %v164_v46 = vsub.f32 %v162_v44, %v163_v45 }
  0xc9   :  { %v166_v47 = vadd.f32 1e-05, %v164_v46 }
  0xcb   :  { %250 = vrsqrt.f32 %v166_v47  ;;  %vm173_vm1 = vweird.f32 %v166_v47 }
  0xd1   :  { %v251_v48 = vpop.eup %250 }
  0xd2   :  { %v168_v49 = vmul.f32 %v251_v48, %v166_v47  ;;  %vm174_vm0 = vweird.f32 %v251_v48 }
  0xd3   :  { %vm175_vm2 = vmor %vm173_vm1, %vm174_vm0 }
  0xd4   :  { %v169_v50 = vmul.f32 %v251_v48, %v168_v49 }
  0xd6   :  { %v170_v51 = vmul.f32 0.5, %v169_v50 }
  0xd8   :  { %v171_v52 = vsub.f32 1.5, %v170_v51 }
  0xda   :  { %v172_v54 = vmul.f32 %v251_v48, %v171_v52 }
  0xdc   :  { %v176_v55 = vsel %vm175_vm2, %v251_v48, %v172_v54 }
  0xdd   :  { %v177_v56 = vmul.f32 %v176_v55, %v165_v53 }
  0xdf   :  { %v179_v58 = vmul.f32 %v177_v56, %v160_v42  ;;  %181 = vst [vmem:[%s342_s5] sm:$0x1] %v177_v56 }
  0xe1   :  { %v180_v59 = vsub.f32 %v178_v57, %v179_v58 }
  0xe3   :  { %182 = vst [vmem:[%s342_s5 + $0x1] sm:$0x1] %v180_v59 }

// kernel: cnn_forward.7
= control target key start
LH: loop header
LB: loop body
LE: loop exit
PB: predicated region body
PF: predicated region fallthrough
CT: control target
= control target key end

     0   :  { %s343_s1 = inlined_call_operand.vmem [shape: bf16[256,128], index: 1, kind: input, shape index: {}]   ;;  %s344_s2 = inlined_call_operand.vmem [shape: f32[1,128], index: 2, kind: input, shape index: {}]   ;;  %s345_s0 = inlined_call_operand.vmem [shape: bf16[8,256], index: 0, kind: input, shape index: {}]   ;;  %s346_s3 = inlined_call_operand.vmem [shape: f32[8,128], index: 3, kind: output, shape index: {}]  }
   0x1   :  { %v256_v0 = vld [vmem:[%s343_s1 + $0x38] sm:$0xff]  ;;  %v255_v2 = vld [vmem:[%s343_s1 + $0x30] sm:$0xff]  ;;  %v254_v4 = vld [vmem:[%s343_s1 + $0x28] sm:$0xff] }
   0x2   :  { %v264_v1 = vld [vmem:[%s343_s1 + $0x78] sm:$0xff]  ;;  %154 = vmatpush.bf16.msra.mxu0 %v256_v0  ;;  %v263_v3 = vld [vmem:[%s343_s1 + $0x70] sm:$0xff]  ;;  %v262_v5 = vld [vmem:[%s343_s1 + $0x68] sm:$0xff] }
   0x3   :  { %167 = vmatpush.bf16.msra.mxu1 %v264_v1  ;;  %v253_v6 = vld [vmem:[%s343_s1 + $0x20] sm:$0xff]  ;;  %v252_v8 = vld [vmem:[%s343_s1 + $0x18] sm:$0xff]  ;;  %v251_v10 = vld [vmem:[%s343_s1 + $0x10] sm:$0xff] }
   0x4   :  { %v261_v7 = vld [vmem:[%s343_s1 + $0x60] sm:$0xff]  ;;  %v260_v9 = vld [vmem:[%s343_s1 + $0x58] sm:$0xff]  ;;  %v259_v11 = vld [vmem:[%s343_s1 + $0x50] sm:$0xff] }
   0x5   :  { %v250_v12 = vld [vmem:[%s343_s1 + $0x8] sm:$0xff]  ;;  %v14_v14 = vld [vmem:[%s345_s0] sm:$0xff] }
   0x6   :  { %155 = vmatpush.bf16.msra.mxu0 %v255_v2  ;;  %v258_v13 = vld [vmem:[%s343_s1 + $0x48] sm:$0xff]  ;;  %v52_v15 = vunpack.c.l.b16 %v14_v14  ;;  %v53_v16 = vunpack.c.h.b16 %v14_v14  ;;  %v249_v17 = vld [vmem:[%s343_s1] sm:$0xff] }
   0x7   :  { %168 = vmatpush.bf16.msra.mxu1 %v263_v3  ;;  %v257_v18 = vld [vmem:[%s343_s1 + $0x40] sm:$0xff] }
   0x8   :  { %v54_v19 = vpack.c.b16 %v52_v15, %v52_v15  ;;  %v55_v20 = vpack.c.b16 %v53_v16, %v53_v16  ;;  %v265_v21 = vld [vmem:[%s344_s2] ss:$0 sm:$0xff] }
   0xa   :  { %156 = vmatpush.bf16.msra.mxu0 %v254_v4 }
   0xb   :  { %169 = vmatpush.bf16.msra.mxu1 %v262_v5 }
   0xe   :  { %157 = vmatpush.bf16.msra.mxu0 %v253_v6 }
   0xf   :  { %170 = vmatpush.bf16.msra.mxu1 %v261_v7 }
  0x12   :  { %158 = vmatpush.bf16.msra.mxu0 %v252_v8 }
  0x13   :  { %171 = vmatpush.bf16.msra.mxu1 %v260_v9 }
  0x16   :  { %159 = vmatpush.bf16.msra.mxu0 %v251_v10 }
  0x17   :  { %172 = vmatpush.bf16.msra.mxu1 %v259_v11 }
  0x1a   :  { %160 = vmatpush.bf16.msra.mxu0 %v250_v12 }
  0x1b   :  { %173 = vmatpush.bf16.msra.mxu1 %v258_v13 }
  0x1e   :  { %161 = vmatpush.bf16.msra.mxu0 %v249_v17 }
  0x1f   :  { %174 = vmatpush.bf16.msra.mxu1 %v257_v18 }
  0x21   :  { %162 = vmatmul.bf16.vlgmr.msra.gmra.mxu0 %v54_v19 }
  0x22   :  { %175 = vmatmul.bf16.vlgmr.msra.gmra.mxu1 %v55_v20 }
  0x9e   :  { %v163_v22 = vpop.f32.mrf.mxu0 }
  0x9f   :  { %v176_v23 = vpop.f32.mrf.mxu1  ;;  %v164_v24 = vadd.f32 %v265_v21, %v163_v22 }
  0xa1   :  { %v177_v25 = vadd.f32 %v176_v23, %v164_v24 }
  0xa3   :  { %180 = vst [vmem:[%s346_s3] sm:$0xff] %v177_v25 }
  0xa6   :  { %v165_v26 = vpop.f32.mrf.mxu0 }
  0xa7   :  { %v178_v27 = vpop.f32.mrf.mxu1 }

</bundles_post_ra>
